<compile_context>
chip_gen: v5e
topology: v5e:2x2
jax: 0.10.0
libtpu: 0.0.40
codegen_flags: <defaults>
</compile_context>

<pallas_src>
import functools

import jax
import jax.numpy as jnp
import numpy as np
from jax.experimental import pallas as pl
from jax.experimental.pallas import tpu as pltpu


def _median_pool_kernel(col_ref, x_ref, o_ref, *, k, p_left, seg_w, out_w):
    """Stride-1 sliding-window lower median along the lane axis of a row tile.

    col_ref : (1, L) int32   column index within its W-wide segment
    x_ref   : (rt, L)        g independent W-wide rows packed on the lane axis
    o_ref   : (rt, L|out_w)  medians of the reflect-padded windows
    """
    x = x_ref[...]
    col = col_ref[...]
    L = x.shape[-1]
    W = seg_w

    # Lane roll: out[:, j] = x[:, (j - s) mod L].  Native-tiled shapes use the
    # XLU rotate (separate issue slot -> nearly free); ragged shapes fall back
    # to the proven slice+concat path.  Rolls are memoized by shift.
    cache = {}

    def lane_roll(s):
        s = s % L
        if s == 0:
            return x
        if s not in cache:
            if L % 128 == 0 and x.shape[0] % 8 == 0:
                cache[s] = pltpu.roll(x, shift=s, axis=1)
            else:
                cache[s] = jnp.concatenate([x[:, L - s:], x[:, :L - s]], axis=1)
        return cache[s]

    # Tap t at output column j needs x_pad[j + t] = x[j - p_left + t] with
    # reflect indexing at the segment edges.  A roll by (p_left - t) gives the
    # interior columns; the few boundary columns get the reflected value
    # (another memoized roll) selected with a column mask.
    taps = []
    for t in range(k):
        tap = lane_roll(p_left - t)
        for j in range(max(0, p_left - t)):                 # left reflect
            c = p_left - t - j                               # -> x[:, c]
            tap = jnp.where(col == j, lane_roll(j - c), tap)
        for j in range(max(0, W + p_left - t), min(W, out_w)):  # right reflect
            c = 2 * W - 2 - (j - p_left + t)                 # -> x[:, c]
            tap = jnp.where(col == j, lane_roll(j - c), tap)
        taps.append(tap)

    if k == 1:
        med = taps[0]
    elif k == 2:
        med = jnp.minimum(taps[0], taps[1])                  # lower median
    elif k == 3:
        a, b, c3 = taps                                      # 4-op median net
        med = jnp.maximum(jnp.minimum(a, b),
                          jnp.minimum(jnp.maximum(a, b), c3))
    else:
        # Odd-even transposition sort: k alternating half-phases suffice.
        vals = list(taps)
        for phase in range(k):
            for i in range(phase % 2, k - 1, 2):
                lo = jnp.minimum(vals[i], vals[i + 1])
                hi = jnp.maximum(vals[i], vals[i + 1])
                vals[i], vals[i + 1] = lo, hi
        med = vals[(k - 1) // 2]                             # torch lower median

    ow = o_ref.shape[-1]
    o_ref[...] = med if ow == med.shape[-1] else med[:, :ow]


def _vmem_budget():
    """(double-buffered working-set budget, vmem_limit_bytes), per generation."""
    try:
        cap = int(pltpu.get_tpu_info().vmem_capacity_bytes)
    except Exception:                      # not queryable -> conservative (v7x)
        cap = 64 * 1024 * 1024
    budget = min(cap // 4, 32 * 1024 * 1024)        # 32 MiB v5e/v6e, 16 MiB v7x
    limit = min((cap * 3) // 4, 96 * 1024 * 1024)   # 96 MiB v5e/v6e, 48 MiB v7x
    return budget, limit


def _choose_row_tile(packed_rows, l_in, l_out, k, itemsize, budget, sublane):
    """Largest sublane-aligned row tile whose pipelined working set fits the
    VMEM budget, clamped so the (parallel) row grid has >= 2 steps."""
    if packed_rows <= sublane:
        return int(packed_rows)                      # one full block
    # double-buffered in/out DMA windows + in-kernel temporaries per row.
    per_row = 2 * (l_in + l_out) * itemsize + (k + 6) * l_in * max(itemsize, 4)
    tile = max(1, budget // max(per_row, 1))
    tile = min(tile, (packed_rows + 1) // 2)         # >= 2 steps (v7x: 2 TCs)
    tile = max(sublane, (tile // sublane) * sublane)
    tile = min(tile, packed_rows)
    if tile < packed_rows:
        tile = max(8, (tile // 8) * 8)               # BlockSpec (8,128) rule
    return int(tile)


def median_pool1d(x, kernel_size=3, stride=1, padding=0, same=True, row_tile=None):
    """JAX/Pallas equivalent of MedianPool1d.forward.  x: (N, C, W)."""
    n, c, w = x.shape
    k = int(kernel_size)
    stride = int(stride)

    # --- padding logic (mirrors MedianPool1d._padding) -----------------------
    if same:
        if w % stride == 0:
            pw = max(k - stride, 0)
        else:
            pw = max(k - w % stride, 0)
        p_left = pw // 2
        p_right = pw - p_left
    else:
        if isinstance(padding, (tuple, list)):
            p_left, p_right = int(padding[0]), int(padding[1])
        else:
            p_left = p_right = int(padding)

    w_pad = w + p_left + p_right
    w_out_dense = w_pad - k + 1               # stride-1 window count
    w_out = (w_pad - k) // stride + 1         # final output width
    assert w_out_dense >= 1, "kernel_size larger than padded width"
    assert p_left < w and p_right < w, "reflect padding requires pad < W"
    assert w_out_dense <= w, "padding wider than kernel_size - 1 is unsupported"

    rows = n * c
    x2d = x.reshape(rows, w)
    itemsize = jnp.dtype(x.dtype).itemsize
    sublane = max(8, (8 * 4) // max(itemsize, 1))   # 8 f32, 16 bf16, 32 int8

    # --- lane-dense repack: pack g independent rows on the 128-lane axis -----
    g = 1
    if w < 128 and w_out_dense == w:
        g_max = max(1, 128 // w)
        for cand in range(min(g_max, rows), 0, -1):
            if rows % cand == 0:
                g = cand
                break
    packed_rows = rows // g
    lanes = g * w
    out_lanes = lanes if g > 1 else w_out_dense
    x_packed = x2d.reshape(packed_rows, lanes)       # free contiguous reshape

    budget, vmem_limit = _vmem_budget()
    if row_tile is None:
        row_tile = _choose_row_tile(packed_rows, lanes, out_lanes, k,
                                    itemsize, budget, sublane)
    else:
        row_tile = min(int(row_tile), packed_rows)
        if row_tile < packed_rows:
            row_tile = max(8, (row_tile // 8) * 8)

    grid = (pl.cdiv(packed_rows, row_tile),)

    # Per-segment column index (tiny constant input; avoids in-kernel int mod).
    col_idx = jnp.asarray((np.arange(lanes, dtype=np.int32) % w).reshape(1, lanes))

    kernel = functools.partial(_median_pool_kernel, k=k, p_left=p_left,
                               seg_w=w, out_w=w_out_dense)

    out_packed = pl.pallas_call(
        kernel,
        out_shape=jax.ShapeDtypeStruct((packed_rows, out_lanes), x.dtype),
        grid=grid,
        in_specs=[
            pl.BlockSpec((1, lanes), lambda i: (0, 0)),          # column index
            pl.BlockSpec((row_tile, lanes), lambda i: (i, 0)),   # packed rows
        ],
        out_specs=pl.BlockSpec((row_tile, out_lanes), lambda i: (i, 0)),
        compiler_params=pltpu.CompilerParams(
            dimension_semantics=("parallel",),
            vmem_limit_bytes=vmem_limit,
        ),
    )(col_idx, x_packed)

    out2d = out_packed.reshape(rows, w) if g > 1 else out_packed
    if stride > 1:
        # TODO(synk): fuse the stride subsampling into the kernel's store.
        out2d = out2d[:, ::stride][:, :w_out]
    return out2d.reshape(n, c, w_out)


def _reference_median_pool1d(x, kernel_size=3, stride=1, same=True):
    """NumPy reference reproducing the PyTorch semantics (lower median)."""
    n, c, w = x.shape
    k = kernel_size
    if same:
        pw = max(k - stride, 0) if w % stride == 0 else max(k - w % stride, 0)
        p_left = pw // 2
        p_right = pw - p_left
    else:
        p_left = p_right = 0
    xp = np.pad(x, ((0, 0), (0, 0), (p_left, p_right)), mode="reflect")
    w_pad = xp.shape[-1]
    w_out = (w_pad - k) // stride + 1
    out = np.empty((n, c, w_out), dtype=x.dtype)
    for j in range(w_out):
        win = xp[:, :, j * stride: j * stride + k]
        out[:, :, j] = np.sort(win, axis=-1)[:, :, (k - 1) // 2]  # lower median
    return out


if __name__ == "__main__":
    def check(x, **kw):
        out = jax.block_until_ready(median_pool1d(x, **kw))
        ref = _reference_median_pool1d(np.asarray(x),
                                       kernel_size=kw.get("kernel_size", 3),
                                       stride=kw.get("stride", 1),
                                       same=kw.get("same", True))
        np.testing.assert_allclose(np.asarray(out), ref, rtol=1e-6, atol=1e-6)
        return out

    keys = jax.random.split(jax.random.PRNGKey(0), 6)

    # 1) Module default config (k=3, stride=1, same=True); lane-dense pack g=8.
    x1 = jax.random.normal(keys[0], (2, 4, 16), dtype=jnp.float32)
    o1 = check(x1, kernel_size=3, stride=1, same=True)
    assert o1.shape == (2, 4, 16)

    # 2) Multi-step row grid (forced small tile), W not a divisor of 128.
    x2 = jax.random.normal(keys[1], (4, 8, 40), dtype=jnp.float32)
    check(x2, kernel_size=3, stride=1, same=True, row_tile=8)

    # 3) k=5 (generic sort branch), odd W, rows not a multiple of 8.
    x3 = jax.random.normal(keys[2], (2, 5, 23), dtype=jnp.float32)
    check(x3, kernel_size=5, stride=1, same=True)

    # 4) Even k => asymmetric reflect padding (p_left=1, p_right=2).
    x4 = jax.random.normal(keys[3], (2, 4, 17), dtype=jnp.float32)
    check(x4, kernel_size=4, stride=1, same=True)

    # 5) W = 128: unpacked, native-tiled path (pltpu.roll taps), 2 grid steps.
    x5 = jax.random.normal(keys[4], (2, 8, 128), dtype=jnp.float32)
    check(x5, kernel_size=3, stride=1, same=True)

    # 6) stride > 1 (dense medians in-kernel, subsample in the wrapper).
    x6 = jax.random.normal(keys[5], (2, 3, 8), dtype=jnp.float32)
    check(x6, kernel_size=3, stride=2, same=True)

    print("KERNEL_OK")
</pallas_src>

<mosaic_0001>
module attributes {stable_mosaic.version = 11 : i64} {
  func.func @_median_pool_kernel(%arg0: i32, %arg1: memref<1x128xi32, #tpu.memory_space<vmem>>, %arg2: memref<1x128xf32, #tpu.memory_space<vmem>>, %arg3: memref<1x128xf32, #tpu.memory_space<vmem>>) attributes {dimension_semantics = [#tpu.dimension_semantics<parallel>], iteration_bounds = array<i64: 1>, scalar_prefetch = 0 : i64, scratch_operands = 0 : i64, tpu.core_type = #tpu.core_type<tc>, window_params = [{pipeline_mode = #tpu.pipeline_mode<synchronous>, transform_indices = @transform_0, window_bounds = array<i64: 1, 128>}, {transform_indices = @transform_1, window_bounds = array<i64: 1, 128>}, {transform_indices = @transform_2, window_bounds = array<i64: 1, 128>}]} {
    %c0 = arith.constant 0 : index
    %c0_0 = arith.constant 0 : index
    %0 = vector.load %arg2[%c0, %c0_0] : memref<1x128xf32, #tpu.memory_space<vmem>>, vector<1x128xf32>
    %c0_1 = arith.constant 0 : index
    %c0_2 = arith.constant 0 : index
    %1 = vector.load %arg1[%c0_1, %c0_2] : memref<1x128xi32, #tpu.memory_space<vmem>>, vector<1x128xi32>
    %2 = vector.extract_strided_slice %0 {offsets = [0, 127], sizes = [1, 1], strides = [1, 1]} : vector<1x128xf32> to vector<1x1xf32>
    %3 = vector.extract_strided_slice %0 {offsets = [0, 0], sizes = [1, 127], strides = [1, 1]} : vector<1x128xf32> to vector<1x127xf32>
    %4 = tpu.concatenate %2, %3 in 1 : vector<1x1xf32>, vector<1x127xf32> -> vector<1x128xf32>
    %c0_i32 = arith.constant 0 : i32
    %5 = vector.broadcast %c0_i32 : i32 to vector<1x128xi32>
    %6 = arith.cmpi eq, %1, %5 : vector<1x128xi32>
    %7 = vector.extract_strided_slice %0 {offsets = [0, 1], sizes = [1, 127], strides = [1, 1]} : vector<1x128xf32> to vector<1x127xf32>
    %8 = vector.extract_strided_slice %0 {offsets = [0, 0], sizes = [1, 1], strides = [1, 1]} : vector<1x128xf32> to vector<1x1xf32>
    %9 = tpu.concatenate %7, %8 in 1 : vector<1x127xf32>, vector<1x1xf32> -> vector<1x128xf32>
    %10 = arith.select %6, %9, %4 : vector<1x128xi1>, vector<1x128xf32>
    %c15_i32 = arith.constant 15 : i32
    %11 = vector.broadcast %c15_i32 : i32 to vector<1x128xi32>
    %12 = arith.cmpi eq, %1, %11 : vector<1x128xi32>
    %13 = arith.select %12, %4, %9 : vector<1x128xi1>, vector<1x128xf32>
    %14 = arith.minimumf %10, %0 : vector<1x128xf32>
    %15 = arith.maximumf %10, %0 : vector<1x128xf32>
    %16 = arith.minimumf %15, %13 : vector<1x128xf32>
    %17 = arith.maximumf %14, %16 : vector<1x128xf32>
    %c0_3 = arith.constant 0 : index
    %c0_4 = arith.constant 0 : index
    %18 = vector.load %arg3[%c0_3, %c0_4] : memref<1x128xf32, #tpu.memory_space<vmem>>, vector<1x128xf32>
    tpu.vector_store %arg3[%c0_3, %c0_4], %17 {strides = array<i32>} : memref<1x128xf32, #tpu.memory_space<vmem>>, vector<1x128xf32>,
    return
  }
  func.func @transform_0(%arg0: i32) -> (i32, i32) {
    %c0_i32 = arith.constant 0 : i32
    %c0_i32_0 = arith.constant 0 : i32
    %c0_i32_1 = arith.constant 0 : i32
    return %c0_i32, %c0_i32_0 : i32, i32
  }
  func.func @transform_1(%arg0: i32) -> (i32, i32) {
    %c0_i32 = arith.constant 0 : i32
    %c0_i32_0 = arith.constant 0 : i32
    return %arg0, %c0_i32 : i32, i32
  }
  func.func @transform_2(%arg0: i32) -> (i32, i32) {
    %c0_i32 = arith.constant 0 : i32
    %c0_i32_0 = arith.constant 0 : i32
    return %arg0, %c0_i32 : i32, i32
  }
}

</mosaic_0001>

<bundles_post_ra>
// kernel: tpu_custom_call.1
= control target key start
LH: loop header
LB: loop body
LE: loop exit
PB: predicated region body
PF: predicated region fallthrough
CT: control target
= control target key end

     0   :  { %7 = vsyncpa [#allocation3], 0  ;;  %s190_s0 = inlined_call_operand.hbm [shape: s32[1,128], index: 0, kind: input, shape index: {}]   ;;  %s191_s1 = inlined_call_operand.hbm [shape: f32[1,128], index: 1, kind: input, shape index: {}]   ;;  %s192_s2 = inlined_call_operand.hbm [shape: f32[1,128], index: 2, kind: output, shape index: {}]  }
   0x1   :  { %8 = vsyncpa [#allocation6], 0 }
   0x2   :  { %9 = vsyncpa [#allocation4], 0  ;;  %s15_s11 = sshll.u32 %s190_s0, 4  ;;  %s161_s12 = smov [#allocation2]   ;;  %s16_s11 = int_to_ptr.hbm [resolvable:$true] %s15_s11 }
   0x3   :  { %s17_s13 = sshll.u32 %s161_s12, 4  ;;  %s26_s16 = sshll.u32 %s191_s1, 4  ;;  %s18_s13 = int_to_ptr.vmem [resolvable:$true] %s17_s13  ;;  %s27_s16 = int_to_ptr.hbm [resolvable:$true] %s26_s16 }
   0x4   :  { %20 = dma.hbm_to_vmem [thread:$0]  %s16_s11, 16, %s18_s13, [#allocation3]  }
   0x5   :  { %s162_s17 = smov [#allocation5]  }
   0x6   :  { %s28_s18 = sshll.u32 %s162_s17, 4  ;;  %s29_s18 = int_to_ptr.vmem [resolvable:$true] %s28_s18 }
   0x7   :  { %31 = dma.hbm_to_vmem [thread:$0]  %s27_s16, 16, %s29_s18, [#allocation6]  }
   0x8   :  { %155 = dma.done.wait [#allocation3], 16  }
   0x9   :  { %156 = vsyncadd [#allocation3], 4294967280 }
   0xa   :  { %157 = dma.done.wait [#allocation6], 16  }
   0xb   :  { %158 = vsyncadd [#allocation6], 4294967280  ;;  %v82_v0 = vld [vmem:[#allocation5] ss:$0 sm:$0xff]  ;;  %s163_s0 = smov 1   ;;  %s164_s19 = smov 127  }
   0xc   :  { %44 = vrot.lane.b32.xlu0 %v82_v0, %s163_s0  ;;  %v41_v2 = vld [vmem:[#allocation2] sm:$0x1]  ;;  %v40_v3 = vld [vmem:[#allocation5] sm:$0x1]  ;;  %s165_s1 = smov [#allocation7]   ;;  %s66_s23 = sshll.u32 %s192_s2, 4  ;;  %s67_s23 = int_to_ptr.hbm [resolvable:$true] %s66_s23 }
   0xd   :  { %vm47_vm0 = vcmp.eq.s32.totalorder %v41_v2, 0  ;;  %vm52_vm1 = vcmp.eq.s32.totalorder %v41_v2, 15  ;;  %s64_s20 = sshll.u32 %s165_s1, 4  ;;  %s65_s20 = int_to_ptr.vmem [resolvable:$true] %s64_s20 }
  0x14   :  { %48 = vrot.lane.b32.xlu0 %v82_v0, %s164_s19 }
  0x7e   :  { %v45_v1 = vpop.permute.xlu0 %44 }
  0x86   :  { %v49_v4 = vpop.permute.xlu0 %48 }
  0x87   :  { %v51_v5 = vsel %vm47_vm0, %v49_v4, %v45_v1  ;;  %v53_v7 = vsel %vm52_vm1, %v45_v1, %v49_v4 }
  0x88   :  { %v55_v6 = vmax.f32 %v51_v5, %v40_v3  ;;  %v54_v8 = vmin.f32 %v51_v5, %v40_v3 }
  0x8a   :  { %v56_v9 = vmin.f32 %v55_v6, %v53_v7 }
  0x8c   :  { %v57_v10 = vmax.f32 %v54_v8, %v56_v9 }
  0x8e   :  { %58 = vst [vmem:[#allocation7] sm:$0x1] %v57_v10 }
  0x8f   :  { %69 = dma.vmem_to_hbm [thread:$0]  %s65_s20, 16, %s67_s23, [#allocation4]  }
  0x90   :  { %159 = dma.done.wait [#allocation4], 16  }
  0x91   :  { %160 = vsyncadd [#allocation4], 4294967280 }
  0x92   :  { %74 = vsyncpa [#allocation3], 1 }
  0x93   :  { %75 = vsyncpa [#allocation6], 1 }
  0x94   :  { %76 = vsyncpa [#allocation4], 1 }

</bundles_post_ra>
